<compile_context>
chip_gen: v5e
topology: v5e:2x2
jax: 0.10.0
libtpu: 0.0.40
codegen_flags: <defaults>
</compile_context>

<pallas_src>
import math
from collections import namedtuple

import numpy as np
import jax
import jax.numpy as jnp
from jax import lax
from jax.experimental import pallas as pl
from jax.experimental.pallas import tpu as pltpu

BlockArgs = namedtuple(
    "BlockArgs",
    ["num_repeat", "kernel_size", "stride", "filters_in", "filters_out",
     "expand_ratio", "squeeze_ratio"],
)


# ----------------------------------------------------------------------------
# blockgen (faithful numpy port of glaucus.gblocks.blockgen, encoder path)
# ----------------------------------------------------------------------------
def blockgen(spatial_in=4096, spatial_out=8, filters_in=2, filters_out=64,
             expand_ratio=4, squeeze_ratio=4, steps=6, mode="encoder",
             min_repeats=2, max_repeats=8):
    round_to_odd = lambda val: np.ceil(val) // 2 * 2 + 1
    strides = np.ones(steps, dtype=int)
    doubles = np.abs(np.log2(spatial_in / spatial_out))
    assert doubles % 1 == 0, "spatial values must be 2**n"
    assert mode in ["encoder", "decoder"]
    for dbx in range(int(doubles)):
        strides[dbx % steps] *= 2
    kernel_percent = (np.linspace(0.015, 0.15, steps)
                      + np.geomspace(0.015, 0.15, steps)) / 2
    if "decoder" in mode:
        kernel_percent = np.flip(kernel_percent)
    filter_steps = np.geomspace(filters_in, filters_out, steps + 1).round().astype(int)
    repeat_steps = np.geomspace(min_repeats, max_repeats, steps).round().astype(int)
    blocks = []
    for sdx in range(steps):
        if mode == "encoder":
            spatial_in /= strides[sdx]
        else:
            spatial_in *= strides[sdx]
        kernel_size = int(max(3, round_to_odd(kernel_percent[sdx] * spatial_in)))
        while kernel_size < strides[sdx]:
            kernel_size += 2
        blocks.append(BlockArgs(
            num_repeat=int(repeat_steps[sdx]), kernel_size=kernel_size,
            stride=int(strides[sdx]), filters_in=int(filter_steps[sdx]),
            filters_out=int(filter_steps[sdx + 1]),
            expand_ratio=expand_ratio, squeeze_ratio=squeeze_ratio))
    return blocks


# ----------------------------------------------------------------------------
# GlaucusNet block expansion (mirrors GlaucusNet.__init__)
# ----------------------------------------------------------------------------
def make_cfg(f_in, f_out, kernel, stride, expand_ratio, squeeze_ratio):
    # even kernels would give L_out != L for stride-1 blocks and silently
    # break the residual add; blockgen only ever emits odd kernels.
    assert kernel % 2 == 1, "even kernel sizes are not supported"
    f_ex = f_in * expand_ratio
    f_sq = int(max(1, round(f_ex / squeeze_ratio)))
    pad = (kernel - 1) // 2 if kernel % 2 == 1 else kernel // 2 - 1
    return dict(filters_in=f_in, filters_out=f_out, filters_ex=f_ex,
                filters_sq=f_sq, kernel=kernel, stride=stride, pad=pad,
                is_reshaped=(f_in != f_out or stride != 1))


def build_glaucus_configs(blocks, width_coef=1.0, depth_coef=1.0):
    round_filters = lambda base, m: int(round(base * m))
    round_repeats = lambda base, m: int(math.ceil(base * m))
    cfgs = []
    for bdx, ba in enumerate(blocks):
        num_repeat = round_repeats(ba.num_repeat, depth_coef)
        f_in = ba.filters_in if bdx == 0 else round_filters(ba.filters_in, width_coef)
        f_out = (ba.filters_out if bdx == len(blocks) - 1
                 else round_filters(ba.filters_out, width_coef))
        cfgs.append(make_cfg(f_in, f_out, ba.kernel_size, ba.stride,
                             ba.expand_ratio, ba.squeeze_ratio))
        for _ in range(num_repeat - 1):
            cfgs.append(make_cfg(f_out, f_out, ba.kernel_size, 1,
                                 ba.expand_ratio, ba.squeeze_ratio))
    return cfgs


# ----------------------------------------------------------------------------
# Deterministic parameter init (inference-mode BatchNorm as scale/bias)
# ----------------------------------------------------------------------------
def init_gblock_params(key, cfg):
    cin, cout = cfg["filters_in"], cfg["filters_out"]
    fex, fsq, K = cfg["filters_ex"], cfg["filters_sq"], cfg["kernel"]
    ks = jax.random.split(key, 24)
    nrm = lambda k, shape, fan: jax.random.normal(k, shape, jnp.float32) / np.sqrt(fan)
    small = lambda k, shape: 0.1 * jax.random.normal(k, shape, jnp.float32)

    def bn(k0, k1, k2, k3, c, eps):
        gamma = 1.0 + 0.1 * jax.random.normal(k0, (c,), jnp.float32)
        beta = small(k1, (c,))
        mean = small(k2, (c,))
        var = 1.0 + 0.1 * jax.random.uniform(k3, (c,), jnp.float32)
        scale = gamma / jnp.sqrt(var + eps)
        bias = beta - mean * scale
        return scale.astype(jnp.float32), bias.astype(jnp.float32)

    p = {}
    p["w_ex"] = nrm(ks[0], (fex, cin, K), cin * K)          # Conv1d weight (O, I, K)
    p["bn0_s"], p["bn0_b"] = bn(ks[1], ks[2], ks[3], ks[4], fex, 1e-3)
    p["w_sr"] = nrm(ks[5], (fsq, fex), fex)                  # se_reduce Linear
    p["b_sr"] = small(ks[6], (fsq,))
    p["w_se"] = nrm(ks[7], (fex, fsq), fsq)                  # se_expand Linear
    p["b_se"] = small(ks[8], (fex,))
    p["w_tl"] = nrm(ks[9], (cout, fex), fex)                 # 1x1 tail conv
    p["bn1_s"], p["bn1_b"] = bn(ks[10], ks[11], ks[12], ks[13], cout, 1e-3)
    if cfg["is_reshaped"]:
        p["w_rs"] = nrm(ks[14], (cout, cin), cin)            # 1x1 strided reshape conv
        p["bnr_s"], p["bnr_b"] = bn(ks[15], ks[16], ks[17], ks[18], cout, 1e-5)
    return p


# ----------------------------------------------------------------------------
# Parameter prep: fold BN scales into weights, pad channels to x8, cast
# matmul weights to bf16, pre-stack the expand-conv weight for the single
# deep-contraction matmul.  Both the Pallas path and the reference consume
# these prepped tensors, so validation is apples-to-apples.
# ----------------------------------------------------------------------------
def _round_up(v, m):
    return (v + m - 1) // m * m


def prep_gblock_params(p, cfg):
    cin, cout = cfg["filters_in"], cfg["filters_out"]
    fex, fsq, K = cfg["filters_ex"], cfg["filters_sq"], cfg["kernel"]
    cin_p, fex_p = _round_up(cin, 8), _round_up(fex, 8)
    fsq_p, cout_p = _round_up(fsq, 8), _round_up(cout, 8)

    def pad2(a, r, c):
        return jnp.pad(a, ((0, r - a.shape[0]), (0, c - a.shape[1])))

    def col(v, r):
        return jnp.pad(v, (0, r - v.shape[0]))[:, None].astype(jnp.float32)

    # fold BN0 scale into the expand-conv weight (per output channel)
    w_ex = p["w_ex"] * p["bn0_s"][:, None, None]             # (Fex, Cin, K) f32
    w_ex = jnp.pad(w_ex, ((0, fex_p - fex), (0, cin_p - cin), (0, 0)))
    w_ex_oik = w_ex.astype(jnp.bfloat16)                     # (Fex_p, Cin_p, K)
    # stacked layout for the single deep-contraction MXU dot:
    # column (t*Cin_p + c) multiplies the tap-t shifted slice of channel c.
    w_ex_stk = jnp.transpose(w_ex_oik, (0, 2, 1)).reshape(fex_p, K * cin_p)

    prep = {
        "w_ex_oik": w_ex_oik,                                # reference conv weight
        "w_ex_stk": w_ex_stk,                                # (Fex_p, K*Cin_p) bf16
        "bn0_b": col(p["bn0_b"], fex_p),
        "w_sr": pad2(p["w_sr"], fsq_p, fex_p).astype(jnp.float32),
        "b_sr": col(p["b_sr"], fsq_p),
        "w_se": pad2(p["w_se"], fex_p, fsq_p).astype(jnp.float32),
        "b_se": col(p["b_se"], fex_p),
        "w_tl": pad2(p["w_tl"] * p["bn1_s"][:, None], cout_p, fex_p).astype(jnp.bfloat16),
        "bn1_b": col(p["bn1_b"], cout_p),
    }
    if cfg["is_reshaped"]:
        prep["w_rs"] = pad2(p["w_rs"] * p["bnr_s"][:, None],
                            cout_p, cin_p).astype(jnp.bfloat16)
        prep["bnr_b"] = col(p["bnr_b"], cout_p)
    return prep


# ----------------------------------------------------------------------------
# Pallas GBlock kernel (one grid step == one batch sample)
# ----------------------------------------------------------------------------
def _hardswish(x):
    return x * jnp.clip(x + 3.0, 0.0, 6.0) * (1.0 / 6.0)


def make_gblock_kernel(K, S, pad, cin_p, L_out, has_reshape):
    q0, s0 = pad // S, pad % S          # identity path = stride-S sample of x
    inv_L = 1.0 / L_out

    def kernel(*refs):
        if has_reshape:
            (x_ref, wex_ref, b0_ref, wsr_ref, bsr_ref, wse_ref, bse_ref,
             wtl_ref, b1_ref, wrs_ref, brs_ref, out_ref, stk_ref) = refs
        else:
            (x_ref, wex_ref, b0_ref, wsr_ref, bsr_ref, wse_ref, bse_ref,
             wtl_ref, b1_ref, out_ref, stk_ref) = refs
            wrs_ref = brs_ref = None

        # --- build the stacked (K*Cin_p, L_out) tap operand ONCE: each
        # shifted slice is taken exactly once, stores land on 8-aligned
        # sublane offsets in an f32 scratch; one cast feeds the MXU. ---
        phases = [x_ref[s] for s in range(S)]          # each (Cin_p, Lph) f32
        for t in range(K):
            sl = phases[t % S][:, t // S:t // S + L_out]
            stk_ref[t * cin_p:(t + 1) * cin_p, :] = sl

        # --- expand conv: single deep-contraction bf16 matmul, f32 acc,
        #     + BN0 bias + hardswish ---
        x_stk = stk_ref[...].astype(jnp.bfloat16)
        h = jnp.dot(wex_ref[...], x_stk, preferred_element_type=jnp.float32)
        h = _hardswish(h + b0_ref[...])                 # (Fex_p, L_out) f32

        # --- squeeze / excitation (per-sample global mean, f32) ---
        pooled = jnp.sum(h, axis=-1, keepdims=True) * inv_L
        sq = _hardswish(jnp.dot(wsr_ref[...], pooled,
                                preferred_element_type=jnp.float32) + bsr_ref[...])
        ex = jnp.dot(wse_ref[...], sq,
                     preferred_element_type=jnp.float32) + bse_ref[...]
        hg = (h * jax.nn.sigmoid(ex)).astype(jnp.bfloat16)

        # --- 1x1 tail conv + BN1 bias ---
        y = jnp.dot(wtl_ref[...], hg,
                    preferred_element_type=jnp.float32) + b1_ref[...]

        # --- residual recovered from the SAME padded input (no 2nd HBM read);
        #     DropConnect is identity at inference ---
        xid = phases[s0][:, q0:q0 + L_out]
        if has_reshape:
            idn = jnp.dot(wrs_ref[...], xid.astype(jnp.bfloat16),
                          preferred_element_type=jnp.float32) + brs_ref[...]
        else:
            idn = xid
        out_ref[...] = y + idn

    return kernel


def gblock_pallas(x, prep, cfg):
    """x: (N, C, L) float32 with C already padded (or paddable) to 8k channels."""
    K, S, pad = cfg["kernel"], cfg["stride"], cfg["pad"]
    cin_p = _round_up(cfg["filters_in"], 8)
    N, c, L = x.shape
    if c < cin_p:
        x = jnp.pad(x, ((0, 0), (0, cin_p - c), (0, 0)))
    elif c > cin_p:
        x = x[:, :cin_p, :]

    L_out = (L + 2 * pad - K) // S + 1
    Lph = (K - 1) // S + L_out
    fout_p = prep["w_tl"].shape[0]

    # phase-split zero-padded input (~|x| bytes, no K-fold im2col):
    # tap t of the conv == phase (t % S), offset (t // S), length L_out.
    # TODO(synk): fuse this pad + phase split into the kernel via a halo
    #             BlockSpec / pl.ANY manual DMA to remove the extra HBM pass.
    x_zp = jnp.pad(x, ((0, 0), (0, 0), (pad, pad)))
    phases = []
    for s in range(S):
        ph = x_zp[:, :, s::S]
        cur = ph.shape[-1]
        if cur >= Lph:
            ph = ph[:, :, :Lph]
        else:
            ph = jnp.pad(ph, ((0, 0), (0, 0), (0, Lph - cur)))
        phases.append(ph)
    x_ph = jnp.stack(phases, axis=1)                 # (N, S, Cin_p, Lph) f32

    weights = [prep["w_ex_stk"], prep["bn0_b"], prep["w_sr"], prep["b_sr"],
               prep["w_se"], prep["b_se"], prep["w_tl"], prep["bn1_b"]]
    if cfg["is_reshaped"]:
        weights += [prep["w_rs"], prep["bnr_b"]]

    in_specs = [pl.BlockSpec((None, S, cin_p, Lph), lambda n: (n, 0, 0, 0))]
    # all weights are 2-D and constant across the grid (no re-DMA per step)
    in_specs += [pl.BlockSpec(w.shape, lambda n: (0, 0)) for w in weights]

    out = pl.pallas_call(
        make_gblock_kernel(K, S, pad, cin_p, L_out, cfg["is_reshaped"]),
        out_shape=jax.ShapeDtypeStruct((N, fout_p, L_out), jnp.float32),
        grid=(N,),
        in_specs=in_specs,
        out_specs=pl.BlockSpec((None, fout_p, L_out), lambda n: (n, 0, 0)),
        scratch_shapes=[pltpu.VMEM((K * cin_p, L_out), jnp.float32)],
        compiler_params=pltpu.CompilerParams(
            dimension_semantics=("parallel",),        # shards batch on v7x megacore
            vmem_limit_bytes=48 * 1024 * 1024),
    )(x_ph, *weights)

    # already (N, C_p, L_out); next block's Cin_p == this Fout_p.
    return out


def glaucus_forward_pallas(x, preps, cfgs):
    for prep, cfg in zip(preps, cfgs):
        x = gblock_pallas(x, prep, cfg)
    x = x[:, :cfgs[-1]["filters_out"], :]
    return x.reshape(x.shape[0], -1)          # encoder: flatten(start_dim=1)


# ----------------------------------------------------------------------------
# Pure-JAX reference using the SAME folded/bf16 weights (mixed-precision
# inference math), so the comparison tolerance can be tight.
# ----------------------------------------------------------------------------
def ref_gblock(x, prep, cfg):
    K, S, pad = cfg["kernel"], cfg["stride"], cfg["pad"]
    cin_p = _round_up(cfg["filters_in"], 8)
    N, c, L = x.shape
    if c < cin_p:
        x = jnp.pad(x, ((0, 0), (0, cin_p - c), (0, 0)))
    elif c > cin_p:
        x = x[:, :cin_p, :]
    L_out = (L + 2 * pad - K) // S + 1

    w = prep["w_ex_oik"]                                      # (Fex_p, Cin_p, K) bf16
    h = lax.conv_general_dilated(
        x.astype(jnp.bfloat16), w, window_strides=(S,), padding=[(pad, pad)],
        dimension_numbers=("NCH", "OIH", "NCH"),
        preferred_element_type=jnp.float32)
    h = _hardswish(h + prep["bn0_b"][None])
    pooled = jnp.mean(h, axis=-1)                             # (N, Fex_p)
    s = _hardswish(pooled @ prep["w_sr"].T + prep["b_sr"][:, 0])
    e = s @ prep["w_se"].T + prep["b_se"][:, 0]
    h = h * jax.nn.sigmoid(e)[:, :, None]
    y = jnp.einsum("of,nfl->nol", prep["w_tl"], h.astype(jnp.bfloat16),
                   preferred_element_type=jnp.float32)
    y = y + prep["bn1_b"][None]
    if cfg["is_reshaped"]:
        xid = lax.slice(x, (0, 0, 0), (N, cin_p, S * (L_out - 1) + 1), (1, 1, S))
        idn = jnp.einsum("oc,ncl->nol", prep["w_rs"], xid.astype(jnp.bfloat16),
                         preferred_element_type=jnp.float32)
        idn = idn + prep["bnr_b"][None]
    else:
        idn = x
    return y + idn


def glaucus_forward_ref(x, preps, cfgs):
    for prep, cfg in zip(preps, cfgs):
        x = ref_gblock(x, prep, cfg)
    x = x[:, :cfgs[-1]["filters_out"], :]
    return x.reshape(x.shape[0], -1)


# ----------------------------------------------------------------------------
if __name__ == "__main__":
    # Small-but-faithful GlaucusNet encoder: blockgen with reduced depth/width.
    blocks = blockgen(steps=3, spatial_in=128, spatial_out=16,
                      filters_in=2, filters_out=16, mode="encoder",
                      min_repeats=2, max_repeats=3)
    cfgs = build_glaucus_configs(blocks, width_coef=1.0, depth_coef=1.0)

    key = jax.random.PRNGKey(0)
    preps = []
    for cfg in cfgs:
        key, sub = jax.random.split(key)
        preps.append(prep_gblock_params(init_gblock_params(sub, cfg), cfg))

    key, kx = jax.random.split(key)
    N, Cin, L = 2, blocks[0].filters_in, 128
    x = jax.random.normal(kx, (N, Cin, L), jnp.float32)

    out = jax.block_until_ready(glaucus_forward_pallas(x, preps, cfgs))
    ref = jax.block_until_ready(glaucus_forward_ref(x, preps, cfgs))

    assert out.shape == ref.shape, (out.shape, ref.shape)
    err = float(jnp.max(jnp.abs(out - ref)))
    scale = float(jnp.max(jnp.abs(ref)))
    tol = 1e-2 * scale + 1e-2
    assert err <= tol, f"mismatch: max abs err {err:.3e} vs tol {tol:.3e} (scale {scale:.3e})"
    print("KERNEL_OK")
</pallas_src>

<mosaic_0001>
module attributes {stable_mosaic.version = 11 : i64} {
  func.func @kernel(%arg0: i32, %arg1: memref<1x2x8x65xf32, #tpu.memory_space<vmem>>, %arg2: memref<8x24xbf16, #tpu.memory_space<vmem>>, %arg3: memref<8x1xf32, #tpu.memory_space<vmem>>, %arg4: memref<8x8xf32, #tpu.memory_space<vmem>>, %arg5: memref<8x1xf32, #tpu.memory_space<vmem>>, %arg6: memref<8x8xf32, #tpu.memory_space<vmem>>, %arg7: memref<8x1xf32, #tpu.memory_space<vmem>>, %arg8: memref<8x8xbf16, #tpu.memory_space<vmem>>, %arg9: memref<8x1xf32, #tpu.memory_space<vmem>>, %arg10: memref<8x8xbf16, #tpu.memory_space<vmem>>, %arg11: memref<8x1xf32, #tpu.memory_space<vmem>>, %arg12: memref<1x8x64xf32, #tpu.memory_space<vmem>>, %arg13: memref<24x64xf32, #tpu.memory_space<vmem>>) attributes {dimension_semantics = [#tpu.dimension_semantics<parallel>], iteration_bounds = array<i64: 2>, scalar_prefetch = 0 : i64, scratch_operands = 1 : i64, tpu.core_type = #tpu.core_type<tc>, window_params = [{transform_indices = @transform_0, window_bounds = array<i64: 1, 2, 8, 65>}, {pipeline_mode = #tpu.pipeline_mode<synchronous>, transform_indices = @transform_1, window_bounds = array<i64: 8, 24>}, {pipeline_mode = #tpu.pipeline_mode<synchronous>, transform_indices = @transform_2, window_bounds = array<i64: 8, 1>}, {pipeline_mode = #tpu.pipeline_mode<synchronous>, transform_indices = @transform_3, window_bounds = array<i64: 8, 8>}, {pipeline_mode = #tpu.pipeline_mode<synchronous>, transform_indices = @transform_4, window_bounds = array<i64: 8, 1>}, {pipeline_mode = #tpu.pipeline_mode<synchronous>, transform_indices = @transform_5, window_bounds = array<i64: 8, 8>}, {pipeline_mode = #tpu.pipeline_mode<synchronous>, transform_indices = @transform_6, window_bounds = array<i64: 8, 1>}, {pipeline_mode = #tpu.pipeline_mode<synchronous>, transform_indices = @transform_7, window_bounds = array<i64: 8, 8>}, {pipeline_mode = #tpu.pipeline_mode<synchronous>, transform_indices = @transform_8, window_bounds = array<i64: 8, 1>}, {pipeline_mode = #tpu.pipeline_mode<synchronous>, transform_indices = @transform_9, window_bounds = array<i64: 8, 8>}, {pipeline_mode = #tpu.pipeline_mode<synchronous>, transform_indices = @transform_10, window_bounds = array<i64: 8, 1>}, {transform_indices = @transform_11, window_bounds = array<i64: 1, 8, 64>}]} {
    %c0 = arith.constant 0 : index
    %c0_0 = arith.constant 0 : index
    %c0_1 = arith.constant 0 : index
    %c0_2 = arith.constant 0 : index
    %0 = vector.load %arg1[%c0, %c0_0, %c0_1, %c0_2] : memref<1x2x8x65xf32, #tpu.memory_space<vmem>>, vector<1x1x8x65xf32>
    %1 = vector.shape_cast %0 : vector<1x1x8x65xf32> to vector<8x65xf32>
    %c0_3 = arith.constant 0 : index
    %c1 = arith.constant 1 : index
    %c0_4 = arith.constant 0 : index
    %c0_5 = arith.constant 0 : index
    %2 = vector.load %arg1[%c0_3, %c1, %c0_4, %c0_5] : memref<1x2x8x65xf32, #tpu.memory_space<vmem>>, vector<1x1x8x65xf32>
    %3 = vector.shape_cast %2 : vector<1x1x8x65xf32> to vector<8x65xf32>
    %4 = vector.extract_strided_slice %1 {offsets = [0, 0], sizes = [8, 64], strides = [1, 1]} : vector<8x65xf32> to vector<8x64xf32>
    %c0_6 = arith.constant 0 : index
    %c0_7 = arith.constant 0 : index
    %5 = vector.load %arg13[%c0_6, %c0_7] : memref<24x64xf32, #tpu.memory_space<vmem>>, vector<8x64xf32>
    tpu.vector_store %arg13[%c0_6, %c0_7], %4 {strides = array<i32>} : memref<24x64xf32, #tpu.memory_space<vmem>>, vector<8x64xf32>,
    %6 = vector.extract_strided_slice %3 {offsets = [0, 0], sizes = [8, 64], strides = [1, 1]} : vector<8x65xf32> to vector<8x64xf32>
    %c8 = arith.constant 8 : index
    %c0_8 = arith.constant 0 : index
    %7 = vector.load %arg13[%c8, %c0_8] : memref<24x64xf32, #tpu.memory_space<vmem>>, vector<8x64xf32>
    tpu.vector_store %arg13[%c8, %c0_8], %6 {strides = array<i32>} : memref<24x64xf32, #tpu.memory_space<vmem>>, vector<8x64xf32>,
    %8 = vector.extract_strided_slice %1 {offsets = [0, 1], sizes = [8, 64], strides = [1, 1]} : vector<8x65xf32> to vector<8x64xf32>
    %c16 = arith.constant 16 : index
    %c0_9 = arith.constant 0 : index
    %9 = vector.load %arg13[%c16, %c0_9] : memref<24x64xf32, #tpu.memory_space<vmem>>, vector<8x64xf32>
    tpu.vector_store %arg13[%c16, %c0_9], %8 {strides = array<i32>} : memref<24x64xf32, #tpu.memory_space<vmem>>, vector<8x64xf32>,
    %c0_10 = arith.constant 0 : index
    %c0_11 = arith.constant 0 : index
    %10 = vector.load %arg13[%c0_10, %c0_11] : memref<24x64xf32, #tpu.memory_space<vmem>>, vector<24x64xf32>
    %11 = arith.truncf %10 : vector<24x64xf32> to vector<24x64xbf16>
    %c0_12 = arith.constant 0 : index
    %c0_13 = arith.constant 0 : index
    %12 = vector.load %arg2[%c0_12, %c0_13] : memref<8x24xbf16, #tpu.memory_space<vmem>>, vector<8x24xbf16>
    %cst = arith.constant dense<0.000000e+00> : vector<8x64xf32>
    %13 = tpu.matmul %12, %11, %cst {dimension_numbers = #tpu.dot_dimension_numbers<[1], [0], [0], [1], [0, 0, 1, 1], [], []>} : vector<8x24xbf16>, vector<24x64xbf16>, vector<8x64xf32> -> vector<8x64xf32>
    %c0_14 = arith.constant 0 : index
    %c0_15 = arith.constant 0 : index
    %14 = vector.load %arg3[%c0_14, %c0_15] : memref<8x1xf32, #tpu.memory_space<vmem>>, vector<8x1xf32>
    %15 = vector.broadcast %14 : vector<8x1xf32> to vector<8x64xf32>
    %16 = arith.addf %13, %15 : vector<8x64xf32>
    %cst_16 = arith.constant 3.000000e+00 : f32
    %17 = vector.broadcast %cst_16 : f32 to vector<8x64xf32>
    %18 = arith.addf %16, %17 : vector<8x64xf32>
    %cst_17 = arith.constant 0.000000e+00 : f32
    %cst_18 = arith.constant 6.000000e+00 : f32
    %19 = vector.broadcast %cst_17 : f32 to vector<8x64xf32>
    %20 = arith.maximumf %19, %18 : vector<8x64xf32>
    %21 = vector.broadcast %cst_18 : f32 to vector<8x64xf32>
    %22 = arith.minimumf %21, %20 : vector<8x64xf32>
    %23 = arith.mulf %16, %22 : vector<8x64xf32>
    %cst_19 = arith.constant 0.166666672 : f32
    %24 = vector.broadcast %cst_19 : f32 to vector<8x64xf32>
    %25 = arith.mulf %23, %24 : vector<8x64xf32>
    %cst_20 = arith.constant dense<0.000000e+00> : vector<8xf32>
    %26 = vector.multi_reduction <add>, %25, %cst_20 [1] : vector<8x64xf32> to vector<8xf32>
    %27 = vector.shape_cast %26 : vector<8xf32> to vector<8x1xf32>
    %cst_21 = arith.constant 1.562500e-02 : f32
    %28 = vector.broadcast %cst_21 : f32 to vector<8x1xf32>
    %29 = arith.mulf %27, %28 : vector<8x1xf32>
    %c0_22 = arith.constant 0 : index
    %c0_23 = arith.constant 0 : index
    %30 = vector.load %arg4[%c0_22, %c0_23] : memref<8x8xf32, #tpu.memory_space<vmem>>, vector<8x8xf32>
    %cst_24 = arith.constant dense<0.000000e+00> : vector<8x1xf32>
    %31 = tpu.matmul %30, %29, %cst_24 {dimension_numbers = #tpu.dot_dimension_numbers<[1], [0], [0], [1], [0, 0, 1, 1], [], []>} : vector<8x8xf32>, vector<8x1xf32>, vector<8x1xf32> -> vector<8x1xf32>
    %c0_25 = arith.constant 0 : index
    %c0_26 = arith.constant 0 : index
    %32 = vector.load %arg5[%c0_25, %c0_26] : memref<8x1xf32, #tpu.memory_space<vmem>>, vector<8x1xf32>
    %33 = arith.addf %31, %32 : vector<8x1xf32>
    %cst_27 = arith.constant 3.000000e+00 : f32
    %34 = vector.broadcast %cst_27 : f32 to vector<8x1xf32>
    %35 = arith.addf %33, %34 : vector<8x1xf32>
    %cst_28 = arith.constant 0.000000e+00 : f32
    %cst_29 = arith.constant 6.000000e+00 : f32
    %36 = vector.broadcast %cst_28 : f32 to vector<8x1xf32>
    %37 = arith.maximumf %36, %35 : vector<8x1xf32>
    %38 = vector.broadcast %cst_29 : f32 to vector<8x1xf32>
    %39 = arith.minimumf %38, %37 : vector<8x1xf32>
    %40 = arith.mulf %33, %39 : vector<8x1xf32>
    %cst_30 = arith.constant 0.166666672 : f32
    %41 = vector.broadcast %cst_30 : f32 to vector<8x1xf32>
    %42 = arith.mulf %40, %41 : vector<8x1xf32>
    %c0_31 = arith.constant 0 : index
    %c0_32 = arith.constant 0 : index
    %43 = vector.load %arg6[%c0_31, %c0_32] : memref<8x8xf32, #tpu.memory_space<vmem>>, vector<8x8xf32>
    %cst_33 = arith.constant dense<0.000000e+00> : vector<8x1xf32>
    %44 = tpu.matmul %43, %42, %cst_33 {dimension_numbers = #tpu.dot_dimension_numbers<[1], [0], [0], [1], [0, 0, 1, 1], [], []>} : vector<8x8xf32>, vector<8x1xf32>, vector<8x1xf32> -> vector<8x1xf32>
    %c0_34 = arith.constant 0 : index
    %c0_35 = arith.constant 0 : index
    %45 = vector.load %arg7[%c0_34, %c0_35] : memref<8x1xf32, #tpu.memory_space<vmem>>, vector<8x1xf32>
    %46 = arith.addf %44, %45 : vector<8x1xf32>
    %47 = arith.negf %46 : vector<8x1xf32>
    %48 = math.exp %47 : vector<8x1xf32>
    %cst_36 = arith.constant 1.000000e+00 : f32
    %49 = vector.broadcast %cst_36 : f32 to vector<8x1xf32>
    %50 = arith.addf %49, %48 : vector<8x1xf32>
    %51 = arith.divf %49, %50 : vector<8x1xf32>
    %52 = vector.broadcast %51 : vector<8x1xf32> to vector<8x64xf32>
    %53 = arith.mulf %25, %52 : vector<8x64xf32>
    %54 = arith.truncf %53 : vector<8x64xf32> to vector<8x64xbf16>
    %c0_37 = arith.constant 0 : index
    %c0_38 = arith.constant 0 : index
    %55 = vector.load %arg8[%c0_37, %c0_38] : memref<8x8xbf16, #tpu.memory_space<vmem>>, vector<8x8xbf16>
    %cst_39 = arith.constant dense<0.000000e+00> : vector<8x64xf32>
    %56 = tpu.matmul %55, %54, %cst_39 {dimension_numbers = #tpu.dot_dimension_numbers<[1], [0], [0], [1], [0, 0, 1, 1], [], []>} : vector<8x8xbf16>, vector<8x64xbf16>, vector<8x64xf32> -> vector<8x64xf32>
    %c0_40 = arith.constant 0 : index
    %c0_41 = arith.constant 0 : index
    %57 = vector.load %arg9[%c0_40, %c0_41] : memref<8x1xf32, #tpu.memory_space<vmem>>, vector<8x1xf32>
    %58 = vector.broadcast %57 : vector<8x1xf32> to vector<8x64xf32>
    %59 = arith.addf %56, %58 : vector<8x64xf32>
    %60 = vector.extract_strided_slice %3 {offsets = [0, 0], sizes = [8, 64], strides = [1, 1]} : vector<8x65xf32> to vector<8x64xf32>
    %c0_42 = arith.constant 0 : index
    %c0_43 = arith.constant 0 : index
    %61 = vector.load %arg10[%c0_42, %c0_43] : memref<8x8xbf16, #tpu.memory_space<vmem>>, vector<8x8xbf16>
    %62 = arith.truncf %60 : vector<8x64xf32> to vector<8x64xbf16>
    %cst_44 = arith.constant dense<0.000000e+00> : vector<8x64xf32>
    %63 = tpu.matmul %61, %62, %cst_44 {dimension_numbers = #tpu.dot_dimension_numbers<[1], [0], [0], [1], [0, 0, 1, 1], [], []>} : vector<8x8xbf16>, vector<8x64xbf16>, vector<8x64xf32> -> vector<8x64xf32>
    %c0_45 = arith.constant 0 : index
    %c0_46 = arith.constant 0 : index
    %64 = vector.load %arg11[%c0_45, %c0_46] : memref<8x1xf32, #tpu.memory_space<vmem>>, vector<8x1xf32>
    %65 = vector.broadcast %64 : vector<8x1xf32> to vector<8x64xf32>
    %66 = arith.addf %63, %65 : vector<8x64xf32>
    %67 = arith.addf %59, %66 : vector<8x64xf32>
    %c0_47 = arith.constant 0 : index
    %c0_48 = arith.constant 0 : index
    %c0_49 = arith.constant 0 : index
    %68 = vector.load %arg12[%c0_47, %c0_48, %c0_49] : memref<1x8x64xf32, #tpu.memory_space<vmem>>, vector<1x8x64xf32>
    %69 = vector.shape_cast %68 : vector<1x8x64xf32> to vector<8x64xf32>
    %70 = vector.shape_cast %67 : vector<8x64xf32> to vector<1x8x64xf32>
    tpu.vector_store %arg12[%c0_47, %c0_48, %c0_49], %70 {strides = array<i32>} : memref<1x8x64xf32, #tpu.memory_space<vmem>>, vector<1x8x64xf32>,
    return
  }
  func.func @transform_0(%arg0: i32) -> (i32, i32, i32, i32) {
    %c0_i32 = arith.constant 0 : i32
    %c0_i32_0 = arith.constant 0 : i32
    %c0_i32_1 = arith.constant 0 : i32
    %c0_i32_2 = arith.constant 0 : i32
    return %arg0, %c0_i32, %c0_i32_0, %c0_i32_1 : i32, i32, i32, i32
  }
  func.func @transform_1(%arg0: i32) -> (i32, i32) {
    %c0_i32 = arith.constant 0 : i32
    %c0_i32_0 = arith.constant 0 : i32
    %c0_i32_1 = arith.constant 0 : i32
    return %c0_i32, %c0_i32_0 : i32, i32
  }
  func.func @transform_2(%arg0: i32) -> (i32, i32) {
    %c0_i32 = arith.constant 0 : i32
    %c0_i32_0 = arith.constant 0 : i32
    %c0_i32_1 = arith.constant 0 : i32
    return %c0_i32, %c0_i32_0 : i32, i32
  }
  func.func @transform_3(%arg0: i32) -> (i32, i32) {
    %c0_i32 = arith.constant 0 : i32
    %c0_i32_0 = arith.constant 0 : i32
    %c0_i32_1 = arith.constant 0 : i32
    return %c0_i32, %c0_i32_0 : i32, i32
  }
  func.func @transform_4(%arg0: i32) -> (i32, i32) {
    %c0_i32 = arith.constant 0 : i32
    %c0_i32_0 = arith.constant 0 : i32
    %c0_i32_1 = arith.constant 0 : i32
    return %c0_i32, %c0_i32_0 : i32, i32
  }
  func.func @transform_5(%arg0: i32) -> (i32, i32) {
    %c0_i32 = arith.constant 0 : i32
    %c0_i32_0 = arith.constant 0 : i32
    %c0_i32_1 = arith.constant 0 : i32
    return %c0_i32, %c0_i32_0 : i32, i32
  }
  func.func @transform_6(%arg0: i32) -> (i32, i32) {
    %c0_i32 = arith.constant 0 : i32
    %c0_i32_0 = arith.constant 0 : i32
    %c0_i32_1 = arith.constant 0 : i32
    return %c0_i32, %c0_i32_0 : i32, i32
  }
  func.func @transform_7(%arg0: i32) -> (i32, i32) {
    %c0_i32 = arith.constant 0 : i32
    %c0_i32_0 = arith.constant 0 : i32
    %c0_i32_1 = arith.constant 0 : i32
    return %c0_i32, %c0_i32_0 : i32, i32
  }
  func.func @transform_8(%arg0: i32) -> (i32, i32) {
    %c0_i32 = arith.constant 0 : i32
    %c0_i32_0 = arith.constant 0 : i32
    %c0_i32_1 = arith.constant 0 : i32
    return %c0_i32, %c0_i32_0 : i32, i32
  }
  func.func @transform_9(%arg0: i32) -> (i32, i32) {
    %c0_i32 = arith.constant 0 : i32
    %c0_i32_0 = arith.constant 0 : i32
    %c0_i32_1 = arith.constant 0 : i32
    return %c0_i32, %c0_i32_0 : i32, i32
  }
  func.func @transform_10(%arg0: i32) -> (i32, i32) {
    %c0_i32 = arith.constant 0 : i32
    %c0_i32_0 = arith.constant 0 : i32
    %c0_i32_1 = arith.constant 0 : i32
    return %c0_i32, %c0_i32_0 : i32, i32
  }
  func.func @transform_11(%arg0: i32) -> (i32, i32, i32) {
    %c0_i32 = arith.constant 0 : i32
    %c0_i32_0 = arith.constant 0 : i32
    %c0_i32_1 = arith.constant 0 : i32
    return %arg0, %c0_i32, %c0_i32_0 : i32, i32, i32
  }
}

</mosaic_0001>

<bundles_post_ra>
// kernel: tpu_custom_call.1
= control target key start
LH: loop header
LB: loop body
LE: loop exit
PB: predicated region body
PF: predicated region fallthrough
CT: control target
= control target key end

     0   :  { %16 = vsyncpa [#allocation4], 0  ;;  %s1099_s0 = inlined_call_operand.hbm [shape: f32[2,2,8,65], index: 0, kind: input, shape index: {}]   ;;  %s1100_s1 = inlined_call_operand.vmem [shape: bf16[8,24], index: 1, kind: input, shape index: {}]   ;;  %s1101_s2 = inlined_call_operand.vmem [shape: f32[8,1], index: 2, kind: input, shape index: {}]   ;;  %s1102_s3 = inlined_call_operand.vmem [shape: f32[8,8], index: 3, kind: input, shape index: {}]   ;;  %s1103_s4 = inlined_call_operand.vmem [shape: f32[8,1], index: 4, kind: input, shape index: {}]   ;;  %s1104_s5 = inlined_call_operand.vmem [shape: f32[8,8], index: 5, kind: input, shape index: {}]   ;;  %s1105_s6 = inlined_call_operand.vmem [shape: f32[8,1], index: 6, kind: input, shape index: {}]   ;;  %s1106_s7 = inlined_call_operand.vmem [shape: bf16[8,8], index: 7, kind: input, shape index: {}]   ;;  %s1107_s8 = inlined_call_operand.vmem [shape: f32[8,1], index: 8, kind: input, shape index: {}]   ;;  %s1108_s9 = inlined_call_operand.vmem [shape: bf16[8,8], index: 9, kind: input, shape index: {}]   ;;  %s1109_s10 = inlined_call_operand.vmem [shape: f32[8,1], index: 10, kind: input, shape index: {}]   ;;  %s1110_s11 = inlined_call_operand.hbm [shape: f32[2,8,64], index: 11, kind: output, shape index: {}]  }
   0x1   :  { %18 = vsyncpa [#allocation4 + $0x1], 0 }
   0x2   :  { %19 = vsyncpa [#allocation5], 0 }
   0x3   :  { %21 = vsyncpa [#allocation5 + $0x1], 0  ;;  %s924_s17 = smov 0   ;;  %s926_s18 = smov 0  }
   0x4   :  { %s928_s19 = smov 0   ;;  %s930_s20 = smov 0  }
   0x5 LB: > { %1116 = sst [smem:[#allocation9_spill]] %s846_s17  ;;  %s945_s21 = sadd.s32 4294967295, %s858_s20   ;;  %s858_s20 = sphi %s930_s20, %s1129_s20   ;;  %s854_s19 = sphi %s928_s19, %s1131_s19   ;;  %s850_s18 = sphi %s926_s18, %s1133_s18   ;;  %s846_s17 = sphi %s924_s17, %s1132_s17  }
   0x6   : > { %1117 = sst [smem:[#allocation10_spill]] %s854_s19  ;;  %s684_s22 = sadd.s32 4294967294, %s858_s20  }
   0x7   : > { %s949_s23 = sadd.s32 1, %s858_s20   ;;  %s34_s24 = sadd.s32 1, %s854_s19 }
   0x8   : > { %1118 = sst [smem:[#allocation11_spill]] %s949_s23  ;;  %s31_s25 = ssub.s32 %s858_s20, %s949_s23 }
   0x9   : > { %p41_p0 = scmp.ne.s32.totalorder %s854_s19, %s850_s18  ;;  %p32_p1 = scmp.eq.s32.totalorder %s31_s25, 0 }
   0xa   : > { %p42_p2 = scmp.eq.s32.totalorder %s858_s20, 0  ;;  %p47_p3 = scmp.ne.s32.totalorder %s850_s18, %s846_s17 }
   0xb   : > { %p48_p4 = scmp.eq.s32.totalorder %s945_s21, 0  ;;  %p281_p7 = scmp.eq.s32.totalorder %s945_s21, 1 }
   0xc   : > { %s961_s26 = scalar_select %p32_p1, %s854_s19, %s34_s24  }
   0xd   : > { %p963_p5 = por %p42_p2, %p41_p0  ;;  %p967_p6 = por %p48_p4, %p47_p3 }
   0xe   : > { %1119 = sst [smem:[#allocation12_spill]] %s961_s26  ;;  %p287_p8 = scmp.eq.s32.totalorder %s684_s22, 1 }
   0xf   : > { %p717_p10 = scmp.lt.s32.totalorder %s858_s20, 2  ;;  %p974_p11 = por %p281_p7, %p41_p0 }
  0x10   : > { %p978_p12 = por %p287_p8, %p47_p3  ;;  %s337_s12 = sand.u32 1, %s854_s19  }
  0x11   : > { %s704_s13 = sshll.u32 %s858_s20, 4  ;;  %s687_s14 = sshll.u32 %s337_s12, 4 }
  0x12   : > { %s1123_s30 = scalar_select %p978_p12, 1, 0 }
  0x13   : > { %s346_s24 = scalar_lea.hbm %s1099_s0, %s704_s13  ;;  %s341_s22 = scalar_lea.vmem [#allocation3], %s687_s14 }
  0x14   : > { %1124 = sst [smem:[#allocation13_spill]] %s1123_s30  ;;  %s347_s25 = sshll.u32 %s346_s24, 4  ;;  %s348_s25 = int_to_ptr.hbm [resolvable:$true] %s347_s25 }
  0x15   : > { %s349_s26 = sshll.u32 %s341_s22, 4  ;;  %p989_p13 = pnand %p717_p10, %p963_p5  ;;  %s350_s26 = int_to_ptr.vmem [resolvable:$true] %s349_s26 }
  0x16   : > { %p690_p0 = scmp.ge.s32.totalorder %s858_s20, 1  ;;  %p357_p1 = scmp.lt.s32.totalorder %s858_s20, 3 }
  0x17   : > { %s338_s19 = scalar_lea.sflag [#allocation4], %s337_s12  ;;  %s762_s30 = sshra.s32 %s348_s25, 4  ;;  %s763_s30 = int_to_ptr.hbm [resolvable:$true] %s762_s30 }
  0x18   : > { %s764_s17 = scalar_lea.hbm %s763_s30, 16  ;;  %p766_p3 = pneg %p989_p13 }
  0x19   : > { %p765_p2 = scmp.ne.s32.totalorder %s763_s30, %s764_s17  ;;  %s769_s27 = scalar_lea.hbm %s1099_s0, 32 }
  0x1a   : > { %p770_p5 = scmp.lt.s32.totalorder %s763_s30, %s1099_s0  ;;  %p771_p8 = scmp.lt.s32.totalorder %s769_s27, %s764_s17 }
  0x1b   : > { %p767_p4 = pnand %p766_p3, %p765_p2 }
  0x1c   : > { %p772_p10 = por %p771_p8, %p770_p5 }
  0x1d   : > { %p768_p7 = pneg %p767_p4 }
  0x1f   : > { %p773_p9 = pnand %p772_p10, %p768_p7 }
  0x21   : > { %776 = shalt.err (!%p773_p9)
}
  0x22   : > { %s860_s12 = smov 128   ;;  %s861_s24 = smov 8  }
  0x23   : > { %712 = dma.hbm_to_vmem [thread:$0]  (!%p989_p13), %s348_s25, 256, %s350_s26, %s338_s19, %s860_s12, %s860_s12, %s861_s24  }
  0x24   : > { %p358_p2 = pnand %p690_p0, %p357_p1 }
  0x25   : > { %s1010_s22 = sand.u32 (!%p358_p2), 1, %s850_s18  }
  0x26   : > { %361 = sbr.rel (%p358_p2) target bundleno = 1006 (0x3ee), region = 64  ;;  %s691_s17 = sshll.u32 (!%p358_p2), %s1010_s22, 4 }
  0x27   : > { %s364_s30 = scalar_lea.sflag (!%p358_p2), [#allocation4], %s1010_s22  ;;  %s367_s13 = scalar_lea.vmem (!%p358_p2), [#allocation3], %s691_s17 }
  0x2b   : > { %837 = dma.done.wait (%p967_p6), %s364_s30, 256  }
  0x2c   : > { %839 = vsyncadd (%p967_p6), %s364_s30, 4294967040  ;;  %v408_v0 = vld [vmem:[%s367_s13] sm:$0xff]  ;;  %v1018_v1 = vld [vmem:[%s367_s13 + $0x8] sm:$0xff]  ;;  %vm411_vm0 = vcmask 523264   ;;  %s862_s19 = smov 127   ;;  %v863_v3 = vmov 0  }
  0x2d   : > { %413 = vst.msk [vmem:[#allocation2 + $0x8] sm:$0xff] %vm411_vm0, %v1018_v1  ;;  %415 = vrot.lane.b32.xlu0 %v408_v0, %s862_s19  ;;  %v425_v2 = vld [vmem:[%s1101_s2] sm:$0xff]  ;;  %756 = vset.pattern.permute.xlu1 %v863_v3  ;;  %vm435_vm1 = vcmask 1043456   ;;  %vm431_vm2 = vcmask 195584   ;;  %vm463_vm3 = vcmask 64512   ;;  %v570_v50 = vpack.c.bf16 %v1018_v1, %v1018_v1  ;;  %s692_s15 = sshll.u32 %s1010_s22, 3 }
  0x2e   : > { %412 = vst.msk [vmem:[#allocation2] sm:$0xff] %vm411_vm0, %v408_v0  ;;  %755 = vset.pattern.permute.xlu0 %v863_v3  ;;  %757 = vset.pattern.permute.xlu2 %v863_v3  ;;  %v424_v11 = vld [vmem:[%s1100_s1] sm:$0xf]  ;;  %s701_s16 = sshll.u32 %s945_s21, 3  ;;  %s406_s30 = scalar_lea.vmem [#allocation6], %s692_s15 }
  0x2f   : > { %v461_v24 = vld [vmem:[%s1102_s3] sm:$0xff]  ;;  %v581_v51 = vsel %vm435_vm1, %v570_v50, 0  ;;  %s609_s17 = scalar_lea.hbm %s1110_s11, %s701_s16  ;;  %s611_s13 = sshll.u32 %s406_s30, 4  ;;  %s612_s13 = int_to_ptr.vmem [resolvable:$true] %s611_s13 }
  0x30   : > { %v462_v25 = vld [vmem:[%s1103_s4] sm:$0xff]  ;;  %590 = vmatpush.bf16.msra.mxu1 %v581_v51  ;;  %s613_s19 = sshll.u32 %s609_s17, 4  ;;  %s599_s23 = scalar_lea.sflag [#allocation5], %s1010_s22  ;;  %s614_s19 = int_to_ptr.hbm [resolvable:$true] %s613_s19 }
  0x31   : > { %v492_v33 = vld [vmem:[%s1104_s5] sm:$0xff]  ;;  %s806_s26 = sshra.s32 %s614_s19, 4  ;;  %s812_s14 = scalar_lea.hbm %s1110_s11, 16  ;;  %s807_s26 = int_to_ptr.hbm [resolvable:$true] %s806_s26 }
  0x32   : > { %v493_v34 = vld [vmem:[%s1105_s6] sm:$0xff]  ;;  %s808_s21 = scalar_lea.hbm %s807_s26, 8  ;;  %p813_p0 = scmp.lt.s32.totalorder %s807_s26, %s1110_s11 }
  0x33   : > { %v569_v52 = vld [vmem:[%s1108_s9] sm:$0xf]  ;;  %p809_p6 = scmp.ne.s32.totalorder %s807_s26, %s808_s21  ;;  %p814_p1 = scmp.lt.s32.totalorder %s812_s14, %s808_s21 }
  0x34   : > { %v420_v8 = vld [vmem:[#allocation2 + $0x8] sm:$0xff]  ;;  %699 = vmatmul.msk.bf16.vlgmr.msra.gmra.mxu1 %vm463_vm3, %v569_v52  ;;  %v544_v53 = vld [vmem:[%s1107_s8] sm:$0xff] }
  0x35   : > { %428 = vperm.xlu0 %755, %v425_v2   ;;  %v419_v7 = vld [vmem:[#allocation2] sm:$0xff]  ;;  %547 = vperm.xlu2 %757, %v544_v53   ;;  %p810_p9 = pnand %p809_p6, %p974_p11  ;;  %p815_p3 = por %p814_p1, %p813_p0 }
  0x36   : > { %v422_v10 = vpack.c.bf16 %v420_v8, %v419_v7  ;;  %v571_v54 = vld [vmem:[%s1109_s10] sm:$0xff] }
  0x37   : > { %v543_v59 = vld [vmem:[%s1106_s7] sm:$0xf]  ;;  %p811_p13 = pneg %p810_p9 }
  0x39   : > { %p816_p4 = pnand %p815_p3, %p811_p13 }
  0x3d   : > { %574 = vperm.xlu2 %757, %v571_v54  }
  0x8f   : > { %v548_v62 = vpop.permute.xlu2 %547 }
  0x97   : > { %v575_v63 = vpop.permute.xlu2 %574 }
  0x9f   : > { %v416_v4 = vpop.permute.xlu0 %415 }
  0xa0   : > { %418 = vst.msk [vmem:[#allocation2 + $0x10] sm:$0xff] %vm411_vm0, %v416_v4 }
  0xa7   : > { %v421_v5 = vld [vmem:[#allocation2 + $0x10] sm:$0xff]  ;;  %v429_v12 = vpop.permute.xlu0 %428 }
  0xa8   : > { %v423_v6 = vpack.c.bf16 %v421_v5, %v421_v5 }
  0xaa   : > { %v437_v9 = vsel %vm435_vm1, %v423_v6, 0 }
  0xab   : > { %445 = vmatpush.bf16.msra.mxu0 %v437_v9 }
  0xaf   : > { %446 = vmatpush.bf16.msra.mxu0 %v422_v10 }
  0xb1   : > { %v592_v60 = vpop.f32.mrf.mxu1 }
  0xb2   : > { %694 = vmatmul.msk.bf16.vlgmr.msra.gmra.mxu0 %vm431_vm2, %v424_v11  ;;  %v593_v2 = vadd.f32 %v592_v60, %v575_v63 }
  0xb9   : > { %v594_v61 = vpop.f32.mrf.mxu1 }
 0x12f   : > { %v448_v13 = vpop.f32.mrf.mxu0 }
 0x130   : > { %v449_v14 = vadd.f32 %v448_v13, %v429_v12 }
 0x132   : > { %v452_v15 = vadd.f32 3.0, %v449_v14 }
 0x134   : > { %v453_v16 = vmax.f32 %v452_v15, 0.0 }
 0x136   : > { %v454_v17 = vmin.f32 %v453_v16, 6.0 }
 0x137   : > { %v450_v18 = vpop.f32.mrf.mxu0 }
 0x138   : > { %v455_v19 = vmul.f32 %v454_v17, %v449_v14 }
 0x13a   : > { %v456_v20 = vmul.f32 0.16666667, %v455_v19 }
 0x13c   : > { %v457_v21 = vsel %vm411_vm0, %v456_v20, 0.0 }
 0x13d   : > { %458 = vadd.xlane.f32.xlu1 %v457_v21 }
 0x1b0   : > { %v459_v22 = vpop.xlane.xlu1 %458 }
 0x1b1   : > { %v460_v23 = vmul.f32 0.015625, %v459_v22 }
 0x1b3   : > { %482 = vmatpush.msra.mxu2 %v460_v23 }
 0x1b4   : > { %695 = vmatmul.msk.f32.vlgmr.msra.gmra.mxu2 %vm463_vm3, %v461_v24 }
 0x237   : > { %v484_v26 = vpop.f32.mrf.mxu2 }
 0x238   : > { %v485_v27 = vadd.f32 %v484_v26, %v462_v25 }
 0x23a   : > { %v487_v28 = vadd.f32 3.0, %v485_v27 }
 0x23c   : > { %v488_v29 = vmax.f32 %v487_v28, 0.0 }
 0x23e   : > { %v489_v30 = vmin.f32 %v488_v29, 6.0 }
 0x240   : > { %v490_v31 = vmul.f32 %v489_v30, %v485_v27 }
 0x242   : > { %v491_v32 = vmul.f32 0.16666667, %v490_v31 }
 0x244   : > { %512 = vmatpush.msrb.mxu2 %v491_v32 }
 0x245   : > { %696 = vmatmul.msk.f32.vlgmr.msrb.gmra.mxu2 %vm463_vm3, %v492_v33 }
 0x2c8   : > { %v514_v35 = vpop.f32.mrf.mxu2 }
 0x2c9   : > { %v515_v36 = vadd.f32 %v514_v35, %v493_v34 }
 0x2cb   : > { %v697_v37 = vmul.f32 -1.442695, %v515_v36 }
 0x2cd   : > { %758 = vpow2.f32 %v697_v37 }
 0x2d3   : > { %v759_v38 = vpop.eup %758 }
 0x2d4   : > { %v520_v39 = vadd.f32 1.0, %v759_v38 }
 0x2d6   : > { %760 = vrcp.f32 %v520_v39  ;;  %v532_v43 = vand.u32 2147483648, %v520_v39  ;;  %v530_v45 = vand.u32 2147483647, %v520_v39  ;;  %vm526_vm5 = vweird.f32 %v520_v39 }
 0x2d8   : > { %v533_v47 = vor.u32 1.1754944e-38, %v532_v43  ;;  %vm531_vm7 = vcmp.eq.f32.partialorder %v530_v45, 8.507059e+37 }
 0x2dc   : > { %v761_v40 = vpop.eup %760 }
 0x2dd   : > { %v522_v41 = vmul.f32 %v761_v40, %v520_v39  ;;  %vm527_vm4 = vweird.f32 %v761_v40 }
 0x2de   : > { %vm528_vm6 = vmor %vm526_vm5, %vm527_vm4 }
 0x2df   : > { %v523_v42 = vsub.f32 1.0, %v522_v41 }
 0x2e1   : > { %v524_v44 = vmul.f32 %v761_v40, %v523_v42 }
 0x2e3   : > { %v525_v46 = vadd.f32 %v761_v40, %v524_v44 }
 0x2e5   : > { %v529_v48 = vsel %vm528_vm6, %v761_v40, %v525_v46 }
 0x2e6   : > { %v534_v49 = vsel %vm531_vm7, %v533_v47, %v529_v48 }
 0x2e7   : > { %538 = vperm.xlu1 %756, %v534_v49  }
 0x359   : > { %v539_v55 = vpop.permute.xlu1 %538 }
 0x35a   : > { %v541_v56 = vmul.f32 %v539_v55, %v456_v20 }
 0x35c   : > { %v542_v57 = vpack.c.bf16 %v541_v56, %v541_v56 }
 0x35e   : > { %v554_v58 = vsel %vm435_vm1, %v542_v57, 0 }
 0x35f   : > { %563 = vmatpush.bf16.msra.mxu3 %v554_v58 }
 0x362   : > { %698 = vmatmul.msk.bf16.vlgmr.msra.gmra.mxu3 %vm463_vm3, %v543_v59 }
 0x3e5   : > { %v565_v0 = vpop.f32.mrf.mxu3 }
 0x3e6   : > { %v566_v1 = vadd.f32 %v565_v0, %v548_v62 }
 0x3e8   : > { %v596_v3 = vadd.f32 %v593_v2, %v566_v1 }
 0x3ea   : > { %597 = vst.msk [vmem:[%s406_s30] sm:$0xff] %vm411_vm0, %v596_v3 }
 0x3eb   : > { %819 = shalt.err (!%p816_p4)
}
 0x3ec   : > { %707 = dma.vmem_to_hbm [thread:$0]  (%p974_p11), %s612_s13, 128, %s614_s19, %s599_s23  }
 0x3ed   : > { %v567_v4 = vpop.f32.mrf.mxu3 }
 0x3ee PF: > { %s1126_s22 = sld [smem:[#allocation9_spill]]  ;;  %p1128_p7 = scmp.ge.s32.totalorder %s858_s20, 2 }
 0x3f0   : > { %p714_p5 = pnand %p1128_p7, %p978_p12 }
 0x3f2   : > { %p715_p8 = pneg %p714_p5 }
 0x3f4   : > { %s625_s12 = sand.u32 1, %s1126_s22  }
 0x3f5   : > { %s626_s24 = scalar_lea.sflag [#allocation5], %s625_s12 }
 0x3f6   : > { %841 = dma.done.wait (%p715_p8), %s626_s24, 128  }
 0x3f7   : > { %843 = vsyncadd (%p715_p8), %s626_s24, 4294967168  ;;  %s1129_s20 = sld [smem:[#allocation11_spill]]  ;;  %s1132_s17 = smov %s850_s18 }
 0x3f8   : > { %s1130_s30 = sld [smem:[#allocation10_spill]] }
 0x3f9   : > { %s1131_s19 = sld [smem:[#allocation12_spill]] }
 0x3fd   : > { %p24_p10 = scmp.ge.s32.totalorder %s1129_s20, 4  }
 0x3fe   : > { %s1133_s18 = smov %s1130_s30 }
 0x3ff   :  { %26 = sbr.rel (!%p24_p10) target bundleno = 5 (0x5), region = 110 }
 0x404   :  { %632 = vsyncpa [#allocation4], 1 }
 0x405   :  { %634 = vsyncpa [#allocation4 + $0x1], 1 }
 0x406   :  { %635 = vsyncpa [#allocation5], 1 }
 0x407   :  { %637 = vsyncpa [#allocation5 + $0x1], 1 }

</bundles_post_ra>
